<compile_context>
chip_gen: v7x
topology: tpu7x:2x2x1
jax: 0.10.0
libtpu: 0.0.40
codegen_flags: <defaults>
</compile_context>

<pallas_src>
import functools
import math

import jax
import jax.numpy as jnp
from jax.experimental import pallas as pl
from jax.experimental.pallas import tpu as pltpu


def _glu_kernel(out_ref, gate_ref, o_ref):
    # Purely elementwise: sigmoid on the EUP, multiply on the VPU.  The kernel
    # is HBM-bandwidth bound; compute runs in the native dtype (Mosaic upcasts
    # internally where a chip requires it).
    o_ref[...] = out_ref[...] * jax.nn.sigmoid(gate_ref[...])


# (target_tile_bytes, max_tile_bytes, vmem_limit_bytes)
_V7X_SAFE_BUDGETS = (4 << 20, 6 << 20, 48 << 20)    # 6 x 6  MiB = 36 <= 48 <= 64 MiB/TC
_BIG_VMEM_BUDGETS = (8 << 20, 12 << 20, 80 << 20)   # 6 x 12 MiB = 72 <= 80 << 128 MiB
_budget_cache = []


def _chip_budgets():
    """Per-chip tiling budgets, derived once at trace time."""
    if not _budget_cache:
        vmem = None
        try:
            vmem = getattr(pltpu.get_tpu_info(), "vmem_capacity_bytes", None)
        except Exception:
            vmem = None
        if vmem is not None and vmem >= (100 << 20):   # v5e / v6e: 128 MiB VMEM
            _budget_cache.append(_BIG_VMEM_BUDGETS)
        else:                                          # v7x (64 MiB/TC) or unknown
            _budget_cache.append(_V7X_SAFE_BUDGETS)
    return _budget_cache[0]


def _sublane_granule(itemsize):
    # A packed vreg holds 32 bytes of sublane depth: 8 rows f32, 16 bf16, 32 int8.
    return max(8, 32 // max(1, itemsize))


def _round_up(v, g):
    return -(-v // g) * g


def _pick_lane_block(half, itemsize, granule, target_bytes, max_tile_bytes):
    """Lane width: a multiple-of-128 divisor of `half` near the tile target."""
    m = half // 128                        # half is a multiple of 128 on this path
    cap = max(1, target_bytes // (granule * itemsize) // 128)
    if m <= cap:
        return half
    best_lo = 1                            # largest divisor of m <= cap
    best_hi = None                         # smallest divisor of m  > cap
    i = 1
    while i * i <= m:
        if m % i == 0:
            for d in (i, m // i):
                if d <= cap:
                    if d > best_lo:
                        best_lo = d
                elif best_hi is None or d < best_hi:
                    best_hi = d
        i += 1
    # Divisor-cliff fix: if the best in-budget divisor is far below the target
    # (prime-ish m would collapse bn to 128 -> 512 B strided DMA segments),
    # overshoot the target as long as a granule-row tile still fits VMEM.
    if best_lo * 4 < cap and best_hi is not None:
        if granule * (best_hi * 128) * itemsize <= max_tile_bytes:
            return best_hi * 128
    return best_lo * 128


def _pick_row_block(pre, row_elems, itemsize, granule, target_bytes):
    """Rows per tile: ~target bytes, granule-aligned, >=2 row blocks when possible."""
    rows = max(1, target_bytes // max(1, row_elems * itemsize))
    if pre >= 2 * granule:
        # Keep the row grid axis splittable so both v7x TensorCores stream HBM.
        rows = min(rows, _round_up(-(-pre // 2), granule))
    if rows >= pre:
        return pre                                  # full extent: always legal
    return min(pre, max(granule, (rows // granule) * granule))


def _cost(pre, half, itemsize):
    return pl.CostEstimate(flops=2 * pre * half,
                           transcendentals=pre * half,
                           bytes_accessed=3 * pre * half * itemsize)


def _glu_fused(x2, half):
    """Fast path. x2: (pre, 2*half) contiguous view; half % 128 == 0.

    Columns [0, half) are `out`, [half, 2*half) are `gate`; the split is
    expressed purely via the gate index_map's block-column offset, so the two
    halves are never materialized separately in HBM.
    """
    pre = x2.shape[0]
    itemsize = jnp.dtype(x2.dtype).itemsize
    target, max_tile, vmem_limit = _chip_budgets()
    granule = _sublane_granule(itemsize)
    bn = _pick_lane_block(half, itemsize, granule, target, max_tile)
    bm = _pick_row_block(pre, bn, itemsize, granule, target)
    nb_half = half // bn                   # gate column offset, in block units

    out_spec = pl.BlockSpec((bm, bn), lambda i, j: (i, j))
    gate_spec = pl.BlockSpec((bm, bn), lambda i, j: (i, j + nb_half))
    o_spec = pl.BlockSpec((bm, bn), lambda i, j: (i, j))

    return pl.pallas_call(
        _glu_kernel,
        out_shape=jax.ShapeDtypeStruct((pre, half), x2.dtype),
        grid_spec=pltpu.PrefetchScalarGridSpec(
            num_scalar_prefetch=0,
            grid=(pl.cdiv(pre, bm), nb_half),
            in_specs=[out_spec, gate_spec],
            out_specs=o_spec,
        ),
        compiler_params=pltpu.CompilerParams(
            dimension_semantics=("parallel", "parallel"),
            vmem_limit_bytes=vmem_limit,
        ),
        cost_estimate=_cost(pre, half, itemsize),
    )(x2, x2)


def _glu_channel(x3, split, post):
    """De-materialized fallback: x3 = (pre, 2*split, post), split % 8 == 0.

    The split lives on the middle axis; out blocks sit at middle-block 0 and
    gate blocks at middle-block 1, so no XLA slice pass is needed even when
    half is not a multiple of 128.
    """
    pre = x3.shape[0]
    half = split * post
    itemsize = jnp.dtype(x3.dtype).itemsize
    target, _, vmem_limit = _chip_budgets()
    # Leading block dim is not one of the last two dims -> no sublane alignment.
    bm = _pick_row_block(pre, half, itemsize, 1, target)

    out_spec = pl.BlockSpec((bm, split, post), lambda i: (i, 0, 0))
    gate_spec = pl.BlockSpec((bm, split, post), lambda i: (i, 1, 0))
    o_spec = pl.BlockSpec((bm, split, post), lambda i: (i, 0, 0))

    return pl.pallas_call(
        _glu_kernel,
        out_shape=jax.ShapeDtypeStruct((pre, split, post), x3.dtype),
        grid_spec=pltpu.PrefetchScalarGridSpec(
            num_scalar_prefetch=0,
            grid=(pl.cdiv(pre, bm),),
            in_specs=[out_spec, gate_spec],
            out_specs=o_spec,
        ),
        compiler_params=pltpu.CompilerParams(
            dimension_semantics=("parallel",),
            vmem_limit_bytes=vmem_limit,
        ),
        cost_estimate=_cost(pre, half, itemsize),
    )(x3, x3)


def _glu_sliced(out_h, gate_h):
    """Last-resort copy fallback (halves pre-sliced by XLA), full-extent last dim."""
    pre, half = out_h.shape
    itemsize = jnp.dtype(out_h.dtype).itemsize
    target, _, vmem_limit = _chip_budgets()
    granule = _sublane_granule(itemsize)
    bm = _pick_row_block(pre, half, itemsize, granule, target)
    spec = pl.BlockSpec((bm, half), lambda i: (i, 0))
    return pl.pallas_call(
        _glu_kernel,
        out_shape=jax.ShapeDtypeStruct((pre, half), out_h.dtype),
        grid_spec=pltpu.PrefetchScalarGridSpec(
            num_scalar_prefetch=0,
            grid=(pl.cdiv(pre, bm),),
            in_specs=[spec, spec],
            out_specs=spec,
        ),
        compiler_params=pltpu.CompilerParams(
            dimension_semantics=("parallel",),
            vmem_limit_bytes=vmem_limit,
        ),
        cost_estimate=_cost(pre, half, itemsize),
    )(out_h, gate_h)


@functools.partial(jax.jit, static_argnames=("dim",))
def glu_forward(x, dim=1):
    """Equivalent of GLU(dim).forward(x) from super_mamba.py."""
    d = dim % x.ndim
    c = x.shape[d]
    if c % 2 != 0:
        raise ValueError(f"GLU: size of dim {dim} must be even, got {c}")
    split = c // 2
    pre = math.prod(x.shape[:d])
    post = math.prod(x.shape[d + 1:])
    half = split * post
    half_shape = x.shape[:d] + (split,) + x.shape[d + 1:]
    if half == 0 or pre == 0:
        return jnp.zeros(half_shape, x.dtype)

    itemsize = jnp.dtype(x.dtype).itemsize
    _, _, vmem_limit = _chip_budgets()

    if half % 128 == 0:
        # Free contiguous reshape; split fused into index_maps; lane-dense tiles.
        res = _glu_fused(x.reshape(pre, 2 * half), half)
    elif split % 8 == 0 and 6 * half * itemsize <= vmem_limit - (8 << 20):
        # De-materialized channel-split fallback (no extra HBM pass).
        res = _glu_channel(x.reshape(pre, 2 * split, post), split, post)
    else:
        # Copy fallback: one extra XLA slice pass, but last dim stays full-extent.
        out_h = jax.lax.slice_in_dim(x, 0, split, axis=d).reshape(pre, half)
        gate_h = jax.lax.slice_in_dim(x, split, c, axis=d).reshape(pre, half)
        res = _glu_sliced(out_h, gate_h)
    return res.reshape(half_shape)


if __name__ == "__main__":
    def _ref(x, dim):
        out_r, gate_r = jnp.split(x, 2, axis=dim)
        return out_r * jax.nn.sigmoid(gate_r)

    key = jax.random.PRNGKey(0)
    k0, k1, k2, k3 = jax.random.split(key, 4)

    # 1) NCHW channel split (the super_mamba usage): fused fast path.
    B, C, H, W = 2, 4, 16, 16
    x = jax.random.normal(k0, (B, C, H, W), dtype=jnp.float32)
    y = glu_forward(x, dim=1)
    jax.block_until_ready(y)
    assert y.shape == (B, C // 2, H, W)
    assert jnp.allclose(y, _ref(x, 1), atol=1e-6, rtol=1e-6), "mismatch (dim=1)"

    # 2) Last-dim split: fused fast path, row axis split into >=2 grid blocks.
    x2 = jax.random.normal(k1, (2, 8, 256), dtype=jnp.float32)
    y2 = glu_forward(x2, dim=-1)
    jax.block_until_ready(y2)
    assert y2.shape == (2, 8, 128)
    assert jnp.allclose(y2, _ref(x2, -1), atol=1e-6, rtol=1e-6), "mismatch (dim=-1)"

    # 3) half % 128 != 0 but split % 8 == 0: de-materialized channel fallback.
    x3 = jax.random.normal(k2, (2, 16, 5, 7), dtype=jnp.float32)
    y3 = glu_forward(x3, dim=1)
    jax.block_until_ready(y3)
    assert y3.shape == (2, 8, 5, 7)
    assert jnp.allclose(y3, _ref(x3, 1), atol=1e-6, rtol=1e-6), "mismatch (channel)"

    # 4) Fully awkward shape: copy fallback.
    x4 = jax.random.normal(k3, (2, 6, 5, 7), dtype=jnp.float32)
    y4 = glu_forward(x4, dim=1)
    jax.block_until_ready(y4)
    assert y4.shape == (2, 3, 5, 7)
    assert jnp.allclose(y4, _ref(x4, 1), atol=1e-6, rtol=1e-6), "mismatch (fallback)"

    print("KERNEL_OK")
</pallas_src>

<mosaic_0001>
module attributes {stable_mosaic.version = 11 : i64} {
  func.func @_glu_kernel(%arg0: i32, %arg1: i32, %arg2: memref<2x512xf32, #tpu.memory_space<vmem>>, %arg3: memref<2x512xf32, #tpu.memory_space<vmem>>, %arg4: memref<2x512xf32, #tpu.memory_space<vmem>>) attributes {dimension_semantics = [#tpu.dimension_semantics<parallel>, #tpu.dimension_semantics<parallel>], iteration_bounds = array<i64: 1, 1>, scalar_prefetch = 0 : i64, scratch_operands = 0 : i64, tpu.core_type = #tpu.core_type<tc>, window_params = [{transform_indices = @transform_0, window_bounds = array<i64: 2, 512>}, {transform_indices = @transform_1, window_bounds = array<i64: 2, 512>}, {transform_indices = @transform_2, window_bounds = array<i64: 2, 512>}]} {
    %c0 = arith.constant 0 : index
    %c0_0 = arith.constant 0 : index
    %0 = vector.load %arg2[%c0, %c0_0] : memref<2x512xf32, #tpu.memory_space<vmem>>, vector<2x512xf32>
    %c0_1 = arith.constant 0 : index
    %c0_2 = arith.constant 0 : index
    %1 = vector.load %arg3[%c0_1, %c0_2] : memref<2x512xf32, #tpu.memory_space<vmem>>, vector<2x512xf32>
    %2 = arith.negf %1 : vector<2x512xf32>
    %3 = math.exp %2 : vector<2x512xf32>
    %cst = arith.constant 1.000000e+00 : f32
    %4 = vector.broadcast %cst : f32 to vector<2x512xf32>
    %5 = arith.addf %4, %3 : vector<2x512xf32>
    %6 = arith.divf %4, %5 : vector<2x512xf32>
    %7 = arith.mulf %0, %6 : vector<2x512xf32>
    %c0_3 = arith.constant 0 : index
    %c0_4 = arith.constant 0 : index
    %8 = vector.load %arg4[%c0_3, %c0_4] : memref<2x512xf32, #tpu.memory_space<vmem>>, vector<2x512xf32>
    tpu.vector_store %arg4[%c0_3, %c0_4], %7 {strides = array<i32>} : memref<2x512xf32, #tpu.memory_space<vmem>>, vector<2x512xf32>,
    return
  }
  func.func @transform_0(%arg0: i32, %arg1: i32) -> (i32, i32) {
    %c0_i32 = arith.constant 0 : i32
    return %arg0, %arg1 : i32, i32
  }
  func.func @transform_1(%arg0: i32, %arg1: i32) -> (i32, i32) {
    %c1_i32 = arith.constant 1 : i32
    %0 = arith.addi %arg1, %c1_i32 : i32
    %c0_i32 = arith.constant 0 : i32
    return %arg0, %0 : i32, i32
  }
  func.func @transform_2(%arg0: i32, %arg1: i32) -> (i32, i32) {
    %c0_i32 = arith.constant 0 : i32
    return %arg0, %arg1 : i32, i32
  }
}

</mosaic_0001>

<bundles_post_ra>
// kernel: glu_forward.1
= control target key start
LH: loop header
LB: loop body
LE: loop exit
PB: predicated region body
PF: predicated region fallthrough
CT: control target
= control target key end

     0   :  { %s83_s1 = inlined_call_operand.vmem [shape: f32[2,1024], index: 1, kind: input, shape index: {}, may-alias: {0,1}]   ;;  %s84_s0 = inlined_call_operand.vmem [shape: f32[2,1024], index: 0, kind: input, shape index: {}, may-alias: {0,1}]   ;;  %s85_s2 = inlined_call_operand.vmem [shape: f32[2,512], index: 2, kind: output, shape index: {}]  }
   0x1   :  { %v53_v0 = vld [vmem:[%s83_s1 + $0x8] sm:$0xff]  ;;  %v33_v4 = vld [vmem:[%s84_s0] sm:$0xff] }
   0x2   :  { %v54_v1 = vmul.f32 -1.442695, %v53_v0 }
   0x4   :  { %55 = vpow2.f32 %v54_v1 }
   0xe   :  { %v56_v2 = vpop.eup %55 }
   0xf   :  { %v38_v3 = vadd.f32 1.0, %v56_v2 }
  0x11   :  { %57 = vrcp.f32 %v38_v3 }
  0x1b   :  { %v58_v5 = vpop.eup %57 }
  0x1c   :  { %v41_v6 = vmul.f32 %v58_v5, %v33_v4 }
  0x1e   :  { %42 = vst [vmem:[%s85_s2] sm:$0xff] %v41_v6 }

</bundles_post_ra>
